<compile_context>
chip_gen: v5e
topology: v5e:2x2
jax: 0.10.0
libtpu: 0.0.40
codegen_flags: <defaults>
</compile_context>

<pallas_src>
import jax
import jax.numpy as jnp
import numpy as np
from jax.experimental import pallas as pl
from jax.experimental.pallas import tpu as pltpu

BN_EPS = 1e-5
LEAKY_SLOPE = 0.01


def build_convgru(B, H, W, CIN, CHID, KH, KW, mxu_dtype=jnp.bfloat16):
    """Returns convgru(x, h, wg, bg, wc, bn_g, bn_b) -> h_next (NHWC / HWIO params)."""
    assert H & (H - 1) == 0 and W & (W - 1) == 0, "H, W must be powers of two"
    assert CHID % 8 == 0, "hidden_dim must be a multiple of 8 (sublane tile)"
    P = B * H * W                              # pixels -> lane dimension
    assert P % 128 == 0, "B*H*W must be a multiple of 128 (lane tile)"
    CP = -(-CIN // 8) * 8                      # input channels padded to a sublane tile
    NTAP = KH * KW
    PAD_Y, PAD_X = KH // 2, KW // 2

    def kernel(x_ref, h_ref, wgx_ref, wgh_ref, bg_ref, wcx_ref, wch_ref,
               bng_ref, bnb_ref, out_ref):
        x = x_ref[...]                                    # (CP, P)   f32, lane-dense
        h = h_ref[...]                                    # (CHID, P) f32
        x_mx = x.astype(mxu_dtype)
        h_mx = h.astype(mxu_dtype)

        # ---- gates: split-weight 1x1 matmuls + ONE fused sigmoid -------------
        # Gate weight rows padded to 8 sublanes in the wrapper; rows 2..7 are zero.
        g8 = (jnp.dot(wgx_ref[...], x_mx, preferred_element_type=jnp.float32) +
              jnp.dot(wgh_ref[...], h_mx, preferred_element_type=jnp.float32))
        gates = jax.nn.sigmoid(g8[0:2, :] + bg_ref[...])  # (2,P): row0=reset, row1=update
        reset = gates[0:1, :]
        update = gates[1:2, :]

        # ---- candidate KxK conv: per-tap matmul-accumulate (no slab, no concat) --
        rh = reset * h                                    # f32 elementwise

        def dot_f32(w, piece):                            # bf16 MXU, f32 accumulate
            return jnp.dot(w, piece.astype(mxu_dtype),
                           preferred_element_type=jnp.float32)

        if KH == 1 and KW == 1:
            acc = (jnp.dot(wcx_ref[0], x_mx, preferred_element_type=jnp.float32) +
                   jnp.dot(wch_ref[0], rh.astype(mxu_dtype),
                           preferred_element_type=jnp.float32))
        else:
            pi = jax.lax.broadcasted_iota(jnp.int32, (1, P), 1)
            xx = jnp.bitwise_and(pi, W - 1)               # x coordinate (W pow-2)
            rr = jnp.bitwise_and(pi, H * W - 1)           # y*W + x within one image
            acc = None
            for ky in range(KH):
                for kx in range(KW):
                    t = ky * KW + kx
                    dy, dx = ky - PAD_Y, kx - PAD_X
                    shift = dy * W + dx                   # flattened pixel offset
                    conds = []
                    if dy > 0:
                        conds.append(rr < (H - dy) * W)   # y + dy <  H
                    if dy < 0:
                        conds.append(rr >= (-dy) * W)     # y + dy >= 0
                    if dx > 0:
                        conds.append(xx < W - dx)         # x + dx <  W
                    if dx < 0:
                        conds.append(xx >= -dx)           # x + dx >= 0
                    mask = None
                    for c in conds:
                        mask = c if mask is None else jnp.logical_and(mask, c)

                    def tap(src):
                        # s[c, p] = src[c, p + shift], zero outside the image
                        s = src if shift == 0 else pltpu.roll(src, shift=(-shift) % P,
                                                              axis=1)
                        return s if mask is None else jnp.where(mask, s, 0.0)

                    d = dot_f32(wcx_ref[t], tap(x)) + dot_f32(wch_ref[t], tap(rh))
                    acc = d if acc is None else acc + d

        # ---- InPlaceABNSync: affine-folded batch-stat BN + leaky_relu(0.01) ----
        inv_n = 1.0 / float(P)
        mean = jnp.sum(acc, axis=1, keepdims=True) * inv_n            # (CHID, 1)
        msq = jnp.sum(acc * acc, axis=1, keepdims=True) * inv_n
        var = msq - mean * mean                                       # biased variance
        scale = bng_ref[...] * jax.lax.rsqrt(var + BN_EPS)            # (CHID, 1)
        shift_c = bnb_ref[...] - mean * scale                         # (CHID, 1)
        cnm = acc * scale + shift_c
        cnm = jnp.maximum(cnm, LEAKY_SLOPE * cnm)                     # leaky_relu

        # ---- GRU state update: (1-u)*h + u*cnm == h + u*(cnm - h) ---------------
        out_ref[...] = h + update * (cnm - h)                         # lane-dense store

    vmem = pl.BlockSpec(memory_space=pltpu.MemorySpace.VMEM)

    # VMEM budget (bytes): resident arrays + a few (C,P) f32 working slabs + headroom.
    resident = (4 * P * (CP + 2 * CHID)
                + 2 * NTAP * CHID * (CP + CHID) + 2 * 8 * (CP + CHID) + 16 * CHID)
    working = 4 * P * (CP + CHID) * 3
    vmem_limit = int(min(max(2 * (resident + working), 8 << 20), 48 << 20))

    call = pl.pallas_call(
        kernel,
        out_shape=jax.ShapeDtypeStruct((CHID, P), jnp.float32),
        in_specs=[vmem] * 9,
        out_specs=vmem,
        compiler_params=pltpu.CompilerParams(vmem_limit_bytes=vmem_limit),
    )

    @jax.jit
    def convgru(x, h, wg, bg, wc, bn_g, bn_b):
        # x: (B,H,W,CIN), h: (B,H,W,CHID), wg: (CIN+CHID,2), bg: (2,),
        # wc: (KH,KW,CIN+CHID,CHID) HWIO, bn_g/bn_b: (CHID,)
        mx = mxu_dtype

        # Wrapper-side layout plumbing: lane-dense (C, B*H*W) operands.
        # TODO(synk): for real channel counts (>=128) keep NHWC (already lane-dense
        # in C) and drop these HBM-level transposes entirely.
        x_t = x.reshape(P, CIN).T                                     # (CIN, P)
        if CP != CIN:
            x_t = jnp.pad(x_t, ((0, CP - CIN), (0, 0)))
        h_t = h.reshape(P, CHID).T                                    # (CHID, P)

        # gate weights, split x/h, transposed, padded to 8 rows (rows 2..7 zero)
        wgx = wg[:CIN].T
        if CP != CIN:
            wgx = jnp.pad(wgx, ((0, 0), (0, CP - CIN)))
        wgx8 = jnp.pad(wgx, ((0, 6), (0, 0))).astype(mx)              # (8, CP)
        wgh8 = jnp.pad(wg[CIN:].T, ((0, 6), (0, 0))).astype(mx)       # (8, CHID)

        # candidate-conv weights, split x/h, per-tap (CHID_out, C_in) blocks
        wcx = wc[:, :, :CIN, :]
        if CP != CIN:
            wcx = jnp.pad(wcx, ((0, 0), (0, 0), (0, CP - CIN), (0, 0)))
        wcx_t = jnp.transpose(wcx.reshape(NTAP, CP, CHID), (0, 2, 1)).astype(mx)
        wch_t = jnp.transpose(wc[:, :, CIN:, :].reshape(NTAP, CHID, CHID),
                              (0, 2, 1)).astype(mx)

        out_t = call(x_t, h_t, wgx8, wgh8, bg.reshape(2, 1), wcx_t, wch_t,
                     bn_g.reshape(CHID, 1), bn_b.reshape(CHID, 1))
        return out_t.T.reshape(B, H, W, CHID)

    return convgru


# --------------------------- pure-JAX reference ----------------------------
def convgru_ref(x, h, wg, bg, wc, bn_g, bn_b):
    comb = jnp.concatenate([x, h], axis=-1)
    gates = jnp.einsum('bhwc,co->bhwo', comb, wg) + bg.reshape(1, 1, 1, 2)
    gates = jax.nn.sigmoid(gates)
    reset, update = gates[..., 0:1], gates[..., 1:2]
    comb2 = jnp.concatenate([x, reset * h], axis=-1)
    cnm = jax.lax.conv_general_dilated(
        comb2, wc, window_strides=(1, 1), padding='SAME',
        dimension_numbers=('NHWC', 'HWIO', 'NHWC'))
    mean = jnp.mean(cnm, axis=(0, 1, 2), keepdims=True)
    var = jnp.mean((cnm - mean) ** 2, axis=(0, 1, 2), keepdims=True)
    cnm = (cnm - mean) * jax.lax.rsqrt(var + BN_EPS) * bn_g.reshape(1, 1, 1, -1) \
          + bn_b.reshape(1, 1, 1, -1)
    cnm = jnp.where(cnm >= 0, cnm, LEAKY_SLOPE * cnm)
    return (1.0 - update) * h + update * cnm


def run_case(key, B, H, W, CIN, CHID, KH, KW, mxu_dtype, atol, rtol):
    kx, kh, kwg, kbg, kwc, kg, kb = jax.random.split(key, 7)
    x = jax.random.normal(kx, (B, H, W, CIN), jnp.float32)
    h = jax.random.normal(kh, (B, H, W, CHID), jnp.float32)
    wg = jax.random.normal(kwg, (CIN + CHID, 2), jnp.float32) * 0.3           # conv_gates W
    bg = jax.random.normal(kbg, (2,), jnp.float32) * 0.1                      # conv_gates b
    wc = jax.random.normal(kwc, (KH, KW, CIN + CHID, CHID), jnp.float32) * 0.1  # conv_can HWIO
    bn_g = 1.0 + 0.1 * jax.random.normal(kg, (CHID,), jnp.float32)            # InPlaceABN gamma
    bn_b = 0.1 * jax.random.normal(kb, (CHID,), jnp.float32)                  # InPlaceABN beta

    fn = build_convgru(B, H, W, CIN, CHID, KH, KW, mxu_dtype=mxu_dtype)
    out = jax.block_until_ready(fn(x, h, wg, bg, wc, bn_g, bn_b))
    ref = convgru_ref(x, h, wg, bg, wc, bn_g, bn_b)
    np.testing.assert_allclose(np.asarray(out), np.asarray(ref), atol=atol, rtol=rtol)


if __name__ == "__main__":
    root = jax.random.PRNGKey(0)
    k1, k2 = jax.random.split(root)
    # conv_Update(hidden_dim=8): ConvGRU(input_dim=hidden_dim, hidden_dim, kernel=(1,1)).
    run_case(k1, B=2, H=16, W=16, CIN=8, CHID=8, KH=1, KW=1,
             mxu_dtype=jnp.float32, atol=2e-3, rtol=2e-3)
    run_case(k1, B=2, H=16, W=16, CIN=8, CHID=8, KH=1, KW=1,
             mxu_dtype=jnp.bfloat16, atol=5e-2, rtol=5e-2)
    # General ConvGRU with a 3x3 candidate conv.
    run_case(k2, B=2, H=16, W=16, CIN=4, CHID=8, KH=3, KW=3,
             mxu_dtype=jnp.float32, atol=2e-3, rtol=2e-3)
    run_case(k2, B=2, H=16, W=16, CIN=4, CHID=8, KH=3, KW=3,
             mxu_dtype=jnp.bfloat16, atol=5e-2, rtol=5e-2)
    print("KERNEL_OK")
</pallas_src>

<mosaic_0001>
module attributes {stable_mosaic.version = 11 : i64} {
  func.func @kernel(%arg0: memref<8x512xf32, #tpu.memory_space<vmem>>, %arg1: memref<8x512xf32, #tpu.memory_space<vmem>>, %arg2: memref<8x8xf32, #tpu.memory_space<vmem>>, %arg3: memref<8x8xf32, #tpu.memory_space<vmem>>, %arg4: memref<2x1xf32, #tpu.memory_space<vmem>>, %arg5: memref<1x8x8xf32, #tpu.memory_space<vmem>>, %arg6: memref<1x8x8xf32, #tpu.memory_space<vmem>>, %arg7: memref<8x1xf32, #tpu.memory_space<vmem>>, %arg8: memref<8x1xf32, #tpu.memory_space<vmem>>, %arg9: memref<8x512xf32, #tpu.memory_space<vmem>>) attributes {dimension_semantics = [], scalar_prefetch = 0 : i64, scratch_operands = 0 : i64, tpu.core_type = #tpu.core_type<tc>} {
    %c0 = arith.constant 0 : index
    %c0_0 = arith.constant 0 : index
    %0 = vector.load %arg0[%c0, %c0_0] : memref<8x512xf32, #tpu.memory_space<vmem>>, vector<8x512xf32>
    %c0_1 = arith.constant 0 : index
    %c0_2 = arith.constant 0 : index
    %1 = vector.load %arg1[%c0_1, %c0_2] : memref<8x512xf32, #tpu.memory_space<vmem>>, vector<8x512xf32>
    %c0_3 = arith.constant 0 : index
    %c0_4 = arith.constant 0 : index
    %2 = vector.load %arg2[%c0_3, %c0_4] : memref<8x8xf32, #tpu.memory_space<vmem>>, vector<8x8xf32>
    %cst = arith.constant dense<0.000000e+00> : vector<8x512xf32>
    %3 = tpu.matmul %2, %0, %cst {dimension_numbers = #tpu.dot_dimension_numbers<[1], [0], [0], [1], [0, 0, 1, 1], [], []>} : vector<8x8xf32>, vector<8x512xf32>, vector<8x512xf32> -> vector<8x512xf32>
    %c0_5 = arith.constant 0 : index
    %c0_6 = arith.constant 0 : index
    %4 = vector.load %arg3[%c0_5, %c0_6] : memref<8x8xf32, #tpu.memory_space<vmem>>, vector<8x8xf32>
    %cst_7 = arith.constant dense<0.000000e+00> : vector<8x512xf32>
    %5 = tpu.matmul %4, %1, %cst_7 {dimension_numbers = #tpu.dot_dimension_numbers<[1], [0], [0], [1], [0, 0, 1, 1], [], []>} : vector<8x8xf32>, vector<8x512xf32>, vector<8x512xf32> -> vector<8x512xf32>
    %6 = arith.addf %3, %5 : vector<8x512xf32>
    %7 = vector.extract_strided_slice %6 {offsets = [0, 0], sizes = [2, 512], strides = [1, 1]} : vector<8x512xf32> to vector<2x512xf32>
    %c0_8 = arith.constant 0 : index
    %c0_9 = arith.constant 0 : index
    %8 = vector.load %arg4[%c0_8, %c0_9] : memref<2x1xf32, #tpu.memory_space<vmem>>, vector<2x1xf32>
    %9 = vector.broadcast %8 : vector<2x1xf32> to vector<2x512xf32>
    %10 = arith.addf %7, %9 : vector<2x512xf32>
    %11 = arith.negf %10 : vector<2x512xf32>
    %12 = math.exp %11 : vector<2x512xf32>
    %cst_10 = arith.constant 1.000000e+00 : f32
    %13 = vector.broadcast %cst_10 : f32 to vector<2x512xf32>
    %14 = arith.addf %13, %12 : vector<2x512xf32>
    %15 = arith.divf %13, %14 : vector<2x512xf32>
    %16 = vector.extract_strided_slice %15 {offsets = [0, 0], sizes = [1, 512], strides = [1, 1]} : vector<2x512xf32> to vector<1x512xf32>
    %17 = vector.extract_strided_slice %15 {offsets = [1, 0], sizes = [1, 512], strides = [1, 1]} : vector<2x512xf32> to vector<1x512xf32>
    %18 = vector.broadcast %16 : vector<1x512xf32> to vector<8x512xf32>
    %19 = arith.mulf %18, %1 : vector<8x512xf32>
    %c0_11 = arith.constant 0 : index
    %c0_12 = arith.constant 0 : index
    %c0_13 = arith.constant 0 : index
    %20 = vector.load %arg5[%c0_11, %c0_12, %c0_13] : memref<1x8x8xf32, #tpu.memory_space<vmem>>, vector<1x8x8xf32>
    %21 = vector.shape_cast %20 : vector<1x8x8xf32> to vector<8x8xf32>
    %cst_14 = arith.constant dense<0.000000e+00> : vector<8x512xf32>
    %22 = tpu.matmul %21, %0, %cst_14 {dimension_numbers = #tpu.dot_dimension_numbers<[1], [0], [0], [1], [0, 0, 1, 1], [], []>} : vector<8x8xf32>, vector<8x512xf32>, vector<8x512xf32> -> vector<8x512xf32>
    %c0_15 = arith.constant 0 : index
    %c0_16 = arith.constant 0 : index
    %c0_17 = arith.constant 0 : index
    %23 = vector.load %arg6[%c0_15, %c0_16, %c0_17] : memref<1x8x8xf32, #tpu.memory_space<vmem>>, vector<1x8x8xf32>
    %24 = vector.shape_cast %23 : vector<1x8x8xf32> to vector<8x8xf32>
    %cst_18 = arith.constant dense<0.000000e+00> : vector<8x512xf32>
    %25 = tpu.matmul %24, %19, %cst_18 {dimension_numbers = #tpu.dot_dimension_numbers<[1], [0], [0], [1], [0, 0, 1, 1], [], []>} : vector<8x8xf32>, vector<8x512xf32>, vector<8x512xf32> -> vector<8x512xf32>
    %26 = arith.addf %22, %25 : vector<8x512xf32>
    %cst_19 = arith.constant dense<0.000000e+00> : vector<8xf32>
    %27 = vector.multi_reduction <add>, %26, %cst_19 [1] : vector<8x512xf32> to vector<8xf32>
    %28 = vector.shape_cast %27 : vector<8xf32> to vector<8x1xf32>
    %cst_20 = arith.constant 0.001953125 : f32
    %29 = vector.broadcast %cst_20 : f32 to vector<8x1xf32>
    %30 = arith.mulf %28, %29 : vector<8x1xf32>
    %31 = arith.mulf %26, %26 : vector<8x512xf32>
    %cst_21 = arith.constant dense<0.000000e+00> : vector<8xf32>
    %32 = vector.multi_reduction <add>, %31, %cst_21 [1] : vector<8x512xf32> to vector<8xf32>
    %33 = vector.shape_cast %32 : vector<8xf32> to vector<8x1xf32>
    %cst_22 = arith.constant 0.001953125 : f32
    %34 = vector.broadcast %cst_22 : f32 to vector<8x1xf32>
    %35 = arith.mulf %33, %34 : vector<8x1xf32>
    %36 = arith.mulf %30, %30 : vector<8x1xf32>
    %37 = arith.subf %35, %36 : vector<8x1xf32>
    %c0_23 = arith.constant 0 : index
    %c0_24 = arith.constant 0 : index
    %38 = vector.load %arg7[%c0_23, %c0_24] : memref<8x1xf32, #tpu.memory_space<vmem>>, vector<8x1xf32>
    %cst_25 = arith.constant 9.99999974E-6 : f32
    %39 = vector.broadcast %cst_25 : f32 to vector<8x1xf32>
    %40 = arith.addf %37, %39 : vector<8x1xf32>
    %41 = math.rsqrt %40 : vector<8x1xf32>
    %42 = arith.mulf %38, %41 : vector<8x1xf32>
    %c0_26 = arith.constant 0 : index
    %c0_27 = arith.constant 0 : index
    %43 = vector.load %arg8[%c0_26, %c0_27] : memref<8x1xf32, #tpu.memory_space<vmem>>, vector<8x1xf32>
    %44 = arith.mulf %30, %42 : vector<8x1xf32>
    %45 = arith.subf %43, %44 : vector<8x1xf32>
    %46 = vector.broadcast %42 : vector<8x1xf32> to vector<8x512xf32>
    %47 = arith.mulf %26, %46 : vector<8x512xf32>
    %48 = vector.broadcast %45 : vector<8x1xf32> to vector<8x512xf32>
    %49 = arith.addf %47, %48 : vector<8x512xf32>
    %cst_28 = arith.constant 0.00999999977 : f32
    %50 = vector.broadcast %cst_28 : f32 to vector<8x512xf32>
    %51 = arith.mulf %50, %49 : vector<8x512xf32>
    %52 = arith.maximumf %49, %51 : vector<8x512xf32>
    %53 = arith.subf %52, %1 : vector<8x512xf32>
    %54 = vector.broadcast %17 : vector<1x512xf32> to vector<8x512xf32>
    %55 = arith.mulf %54, %53 : vector<8x512xf32>
    %56 = arith.addf %1, %55 : vector<8x512xf32>
    %c0_29 = arith.constant 0 : index
    %c0_30 = arith.constant 0 : index
    %57 = vector.load %arg9[%c0_29, %c0_30] : memref<8x512xf32, #tpu.memory_space<vmem>>, vector<8x512xf32>
    tpu.vector_store %arg9[%c0_29, %c0_30], %56 {strides = array<i32>} : memref<8x512xf32, #tpu.memory_space<vmem>>, vector<8x512xf32>,
    return
  }
}

</mosaic_0001>

<bundles_post_ra>
// kernel: convgru.1
= control target key start
LH: loop header
LB: loop body
LE: loop exit
PB: predicated region body
PF: predicated region fallthrough
CT: control target
= control target key end

     0   :  { %vm42_vm0 = vcmask 64512   ;;  %v597_v3 = vmov 0   ;;  %s784_s1 = inlined_call_operand.vmem [shape: f32[8,512], index: 1, kind: input, shape index: {}]   ;;  %s785_s3 = inlined_call_operand.vmem [shape: f32[8,8], index: 3, kind: input, shape index: {}]   ;;  %s786_s0 = inlined_call_operand.vmem [shape: f32[8,512], index: 0, kind: input, shape index: {}]   ;;  %s787_s4 = inlined_call_operand.vmem [shape: f32[2,1], index: 4, kind: input, shape index: {}]   ;;  %s788_s2 = inlined_call_operand.vmem [shape: f32[8,8], index: 2, kind: input, shape index: {}]   ;;  %s789_s6 = inlined_call_operand.vmem [shape: f32[1,8,8], index: 6, kind: input, shape index: {}]   ;;  %s790_s5 = inlined_call_operand.vmem [shape: f32[1,8,8], index: 5, kind: input, shape index: {}]   ;;  %s791_s7 = inlined_call_operand.vmem [shape: f32[8,1], index: 7, kind: input, shape index: {}]   ;;  %s792_s8 = inlined_call_operand.vmem [shape: f32[8,1], index: 8, kind: input, shape index: {}]   ;;  %s793_s9 = inlined_call_operand.vmem [shape: f32[8,512], index: 9, kind: output, shape index: {}]  }
   0x1   :  { %v651_v0 = vld [vmem:[%s784_s1] sm:$0xff]  ;;  %v656_v1 = vld [vmem:[%s784_s1 + $0x8] sm:$0xff]  ;;  %v661_v2 = vld [vmem:[%s784_s1 + $0x10] sm:$0xff]  ;;  %576 = vset.pattern.permute.xlu0 %v597_v3  ;;  %577 = vset.pattern.permute.xlu1 %v597_v3 }
   0x2   :  { %61 = vmatpush.msra.mxu0 %v651_v0  ;;  %81 = vmatpush.msra.mxu1 %v656_v1  ;;  %v668_v4 = vld [vmem:[%s784_s1 + $0x18] sm:$0xff]  ;;  %v41_v5 = vld [vmem:[%s785_s3] sm:$0xff]  ;;  %v683_v7 = vld [vmem:[%s786_s0 + $0x8] sm:$0xff] }
   0x3   :  { %101 = vmatpush.msra.mxu2 %v661_v2  ;;  %121 = vmatpush.msra.mxu3 %v668_v4  ;;  %v678_v6 = vld [vmem:[%s786_s0] sm:$0xff]  ;;  %v690_v8 = vld [vmem:[%s786_s0 + $0x10] sm:$0xff]  ;;  %v695_v9 = vld [vmem:[%s786_s0 + $0x18] sm:$0xff] }
   0x4   :  { %555 = vmatmul.msk.f32.vlgmr.msra.gmra.mxu0 %vm42_vm0, %v41_v5  ;;  %556 = vmatmul.msk.f32.vlgmr.msra.gmra.mxu1 %vm42_vm0, %v41_v5  ;;  %v209_v10 = vld [vmem:[%s787_s4] sm:$0x3] }
   0x5   :  { %557 = vmatmul.msk.f32.vlgmr.msra.gmra.mxu2 %vm42_vm0, %v41_v5  ;;  %558 = vmatmul.msk.f32.vlgmr.msra.gmra.mxu3 %vm42_vm0, %v41_v5  ;;  %v40_v11 = vld [vmem:[%s788_s2] sm:$0xff] }
   0x6   :  { %144 = vmatpush.msrb.mxu0 %v678_v6  ;;  %164 = vmatpush.msrb.mxu1 %v683_v7 }
   0x7   :  { %184 = vmatpush.msrb.mxu2 %v690_v8  ;;  %204 = vmatpush.msrb.mxu3 %v695_v9 }
   0x8   :  { %212 = vperm.xlu0 %576, %v209_v10   ;;  %578 = vset.pattern.permute.xlu2 %v597_v3 }
   0xc   :  { %559 = vmatmul.msk.f32.vlgmr.msrb.gmra.mxu0 %vm42_vm0, %v40_v11  ;;  %560 = vmatmul.msk.f32.vlgmr.msrb.gmra.mxu1 %vm42_vm0, %v40_v11 }
   0xd   :  { %561 = vmatmul.msk.f32.vlgmr.msrb.gmra.mxu2 %vm42_vm0, %v40_v11  ;;  %562 = vmatmul.msk.f32.vlgmr.msrb.gmra.mxu3 %vm42_vm0, %v40_v11 }
  0x7a   :  { %v213_v14 = vpop.permute.xlu0 %212 }
  0x81   :  { %v63_v12 = vpop.f32.mrf.mxu0  ;;  %v83_v13 = vpop.f32.mrf.mxu1 }
  0x88   :  { %v103_v15 = vpop.f32.mrf.mxu2  ;;  %v123_v16 = vpop.f32.mrf.mxu3 }
  0x89   :  { %v146_v17 = vpop.f32.mrf.mxu0  ;;  %v166_v18 = vpop.f32.mrf.mxu1 }
  0x8a   :  { %v147_v19 = vadd.f32 %v146_v17, %v63_v12  ;;  %v167_v20 = vadd.f32 %v166_v18, %v83_v13 }
  0x8c   :  { %v215_v21 = vadd.f32 %v213_v14, %v147_v19  ;;  %v216_v22 = vadd.f32 %v213_v14, %v167_v20  ;;  %v304_v20 = vld [vmem:[%s789_s6] sm:$0xff] }
  0x8e   :  { %v563_v23 = vmul.f32 -1.442695, %v215_v21  ;;  %v564_v24 = vmul.f32 -1.442695, %v216_v22 }
  0x90   :  { %579 = vpow2.f32 %v563_v23  ;;  %v186_v25 = vpop.f32.mrf.mxu2  ;;  %v206_v26 = vpop.f32.mrf.mxu3 }
  0x91   :  { %581 = vpow2.f32 %v564_v24  ;;  %v187_v27 = vadd.f32 %v186_v25, %v103_v15  ;;  %v207_v28 = vadd.f32 %v206_v26, %v123_v16 }
  0x93   :  { %v217_v29 = vadd.f32 %v213_v14, %v187_v27  ;;  %v218_v30 = vadd.f32 %v213_v14, %v207_v28 }
  0x95   :  { %v565_v31 = vmul.f32 -1.442695, %v217_v29  ;;  %v566_v32 = vmul.f32 -1.442695, %v218_v30 }
  0x96   :  { %v580_v33 = vpop.eup %579 }
  0x97   :  { %v582_v34 = vpop.eup %581  ;;  %v231_v35 = vadd.f32 1.0, %v580_v33  ;;  %583 = vpow2.f32 %v565_v31 }
  0x98   :  { %v232_v36 = vadd.f32 1.0, %v582_v34  ;;  %585 = vpow2.f32 %v566_v32  ;;  %v303_v34 = vld [vmem:[%s790_s5] sm:$0xff] }
  0x99   :  { %587 = vrcp.f32 %v231_v35  ;;  %v244_v46 = vand.u32 2147483647, %v231_v35  ;;  %v246_v47 = vand.u32 2147483648, %v231_v35  ;;  %vm240_vm3 = vweird.f32 %v231_v35 }
  0x9a   :  { %589 = vrcp.f32 %v232_v36  ;;  %v259_v50 = vand.u32 2147483647, %v232_v36  ;;  %v261_v51 = vand.u32 2147483648, %v232_v36  ;;  %vm255_vm4 = vweird.f32 %v232_v36 }
  0x9b   :  { %vm245_vm6 = vcmp.eq.f32.partialorder %v244_v46, 8.507059e+37  ;;  %v247_v57 = vor.u32 1.1754944e-38, %v246_v47 }
  0x9c   :  { %vm260_vm8 = vcmp.eq.f32.partialorder %v259_v50, 8.507059e+37  ;;  %v262_v61 = vor.u32 1.1754944e-38, %v261_v51 }
  0x9d   :  { %v584_v37 = vpop.eup %583 }
  0x9e   :  { %v586_v38 = vpop.eup %585  ;;  %v233_v39 = vadd.f32 1.0, %v584_v37 }
  0x9f   :  { %v588_v40 = vpop.eup %587  ;;  %v713_v41 = vadd.f32 1.0, %v586_v38 }
  0xa0   :  { %v590_v42 = vpop.eup %589  ;;  %v236_v43 = vmul.f32 %v588_v40, %v231_v35  ;;  %591 = vrcp.f32 %v233_v39  ;;  %vm241_vm1 = vweird.f32 %v588_v40  ;;  %v274_v5 = vand.u32 2147483647, %v233_v39 }
  0xa1   :  { %v251_v44 = vmul.f32 %v590_v42, %v232_v36  ;;  %593 = vrcp.f32 %v713_v41  ;;  %vm256_vm2 = vweird.f32 %v590_v42  ;;  %vm242_vm5 = vmor %vm240_vm3, %vm241_vm1  ;;  %v276_v13 = vand.u32 2147483648, %v233_v39 }
  0xa2   :  { %v237_v45 = vsub.f32 1.0, %v236_v43  ;;  %vm257_vm7 = vmor %vm255_vm4, %vm256_vm2  ;;  %v291_v16 = vand.u32 2147483648, %v713_v41  ;;  %v289_v19 = vand.u32 2147483647, %v713_v41  ;;  %vm270_vm11 = vweird.f32 %v233_v39 }
  0xa3   :  { %v252_v48 = vsub.f32 1.0, %v251_v44  ;;  %v277_v23 = vor.u32 1.1754944e-38, %v276_v13  ;;  %vm285_vm13 = vweird.f32 %v713_v41  ;;  %vm275_vm14 = vcmp.eq.f32.partialorder %v274_v5, 8.507059e+37 }
  0xa4   :  { %v238_v49 = vmul.f32 %v588_v40, %v237_v45  ;;  %v292_v26 = vor.u32 1.1754944e-38, %v291_v16  ;;  %vm290_vm1 = vcmp.eq.f32.partialorder %v289_v19, 8.507059e+37 }
  0xa5   :  { %v253_v52 = vmul.f32 %v590_v42, %v252_v48 }
  0xa6   :  { %v592_v53 = vpop.eup %591  ;;  %v239_v54 = vadd.f32 %v588_v40, %v238_v49 }
  0xa7   :  { %v594_v55 = vpop.eup %593  ;;  %v266_v56 = vmul.f32 %v592_v53, %v233_v39  ;;  %v254_v58 = vadd.f32 %v590_v42, %v253_v52  ;;  %vm271_vm9 = vweird.f32 %v592_v53 }
  0xa8   :  { %v281_v59 = vmul.f32 %v594_v55, %v713_v41  ;;  %v243_v60 = vsel %vm242_vm5, %v588_v40, %v239_v54  ;;  %vm286_vm10 = vweird.f32 %v594_v55  ;;  %vm272_vm12 = vmor %vm270_vm11, %vm271_vm9 }
  0xa9   :  { %v267_v62 = vsub.f32 1.0, %v266_v56  ;;  %v717_v63 = vsel %vm245_vm6, %v247_v57, %v243_v60  ;;  %v258_v3 = vsel %vm257_vm7, %v590_v42, %v254_v58  ;;  %vm287_vm15 = vmor %vm285_vm13, %vm286_vm10 }
  0xaa   :  { %v282_v10 = vsub.f32 1.0, %v281_v59  ;;  %v295_v11 = vperm.slane %v717_v63, 0  ;;  %v720_v12 = vsel %vm260_vm8, %v262_v61, %v258_v3 }
  0xab   :  { %v296_v14 = vperm.slane %v720_v12, 0  ;;  %v268_v15 = vmul.f32 %v592_v53, %v267_v62 }
  0xac   :  { %v299_v17 = vmul.f32 %v295_v11, %v651_v0  ;;  %v283_v18 = vmul.f32 %v594_v55, %v282_v10  ;;  %v489_v10 = vld [vmem:[%s791_s7] sm:$0xff] }
  0xad   :  { %v300_v21 = vmul.f32 %v296_v14, %v656_v1  ;;  %v269_v22 = vadd.f32 %v592_v53, %v268_v15  ;;  %v502_v15 = vld [vmem:[%s792_s8] sm:$0xff] }
  0xae   :  { %323 = vmatpush.msra.mxu0 %v299_v17  ;;  %v284_v24 = vadd.f32 %v594_v55, %v283_v18 }
  0xaf   :  { %343 = vmatpush.msra.mxu1 %v300_v21  ;;  %v273_v25 = vsel %vm272_vm12, %v592_v53, %v269_v22  ;;  %567 = vmatmul.msk.f32.vlgmr.msra.gmra.mxu0 %vm42_vm0, %v304_v20 }
  0xb0   :  { %v732_v27 = vsel %vm275_vm14, %v277_v23, %v273_v25  ;;  %v288_v28 = vsel %vm287_vm15, %v594_v55, %v284_v24  ;;  %568 = vmatmul.msk.f32.vlgmr.msra.gmra.mxu1 %vm42_vm0, %v304_v20  ;;  %406 = vmatpush.msrb.mxu0 %v678_v6 }
  0xb1   :  { %v297_v29 = vperm.slane %v732_v27, 0  ;;  %v737_v30 = vsel %vm290_vm1, %v292_v26, %v288_v28  ;;  %426 = vmatpush.msrb.mxu1 %v683_v7 }
  0xb2   :  { %v298_v31 = vperm.slane %v737_v30, 0 }
  0xb3   :  { %v301_v32 = vmul.f32 %v297_v29, %v661_v2 }
  0xb4   :  { %v302_v33 = vmul.f32 %v298_v31, %v668_v4 }
  0xb5   :  { %363 = vmatpush.msra.mxu2 %v301_v32 }
  0xb6   :  { %383 = vmatpush.msra.mxu3 %v302_v33  ;;  %569 = vmatmul.msk.f32.vlgmr.msra.gmra.mxu2 %vm42_vm0, %v304_v20 }
  0xb7   :  { %570 = vmatmul.msk.f32.vlgmr.msra.gmra.mxu3 %vm42_vm0, %v304_v20  ;;  %446 = vmatpush.msrb.mxu2 %v690_v8 }
  0xb8   :  { %466 = vmatpush.msrb.mxu3 %v695_v9  ;;  %571 = vmatmul.msk.f32.vlgmr.msrb.gmra.mxu0 %vm42_vm0, %v303_v34 }
  0xb9   :  { %572 = vmatmul.msk.f32.vlgmr.msrb.gmra.mxu1 %vm42_vm0, %v303_v34 }
  0xbe   :  { %573 = vmatmul.msk.f32.vlgmr.msrb.gmra.mxu2 %vm42_vm0, %v303_v34 }
  0xbf   :  { %574 = vmatmul.msk.f32.vlgmr.msrb.gmra.mxu3 %vm42_vm0, %v303_v34 }
 0x12c   :  { %v325_v6 = vpop.f32.mrf.mxu0 }
 0x12d   :  { %v345_v7 = vpop.f32.mrf.mxu1 }
 0x135   :  { %v408_v35 = vpop.f32.mrf.mxu0 }
 0x136   :  { %v428_v37 = vpop.f32.mrf.mxu1  ;;  %v409_v39 = vadd.f32 %v408_v35, %v325_v6  ;;  %v535_v35 = vperm.slane %v717_v63, 1 }
 0x137   :  { %v429_v40 = vadd.f32 %v428_v37, %v345_v7 }
 0x138   :  { %v477_v41 = vmul.f32 %v409_v39, %v409_v39 }
 0x139   :  { %v365_v36 = vpop.f32.mrf.mxu2  ;;  %v478_v8 = vmul.f32 %v429_v40, %v429_v40  ;;  %v471_v9 = vadd.f32 %v429_v40, %v409_v39 }
 0x13a   :  { %v385_v38 = vpop.f32.mrf.mxu3 }
 0x13b   :  { %v481_v48 = vadd.f32 %v478_v8, %v477_v41  ;;  %v538_v8 = vperm.slane %v737_v30, 1 }
 0x141   :  { %v448_v42 = vpop.f32.mrf.mxu2 }
 0x142   :  { %v449_v43 = vadd.f32 %v448_v42, %v365_v36  ;;  %v468_v44 = vpop.f32.mrf.mxu3  ;;  %v536_v36 = vperm.slane %v720_v12, 1 }
 0x143   :  { %v469_v45 = vadd.f32 %v468_v44, %v385_v38  ;;  %v537_v38 = vperm.slane %v732_v27, 1 }
 0x144   :  { %v472_v46 = vadd.f32 %v471_v9, %v449_v43  ;;  %v479_v47 = vmul.f32 %v449_v43, %v449_v43 }
 0x145   :  { %v480_v50 = vmul.f32 %v469_v45, %v469_v45 }
 0x146   :  { %v473_v49 = vadd.f32 %v472_v46, %v469_v45  ;;  %v482_v51 = vadd.f32 %v481_v48, %v479_v47 }
 0x148   :  { %474 = vadd.xlane.f32.xlu0 %v473_v49  ;;  %v483_v52 = vadd.f32 %v482_v51, %v480_v50 }
 0x14a   :  { %484 = vadd.xlane.f32.xlu1 %v483_v52 }
 0x1bb   :  { %v475_v53 = vpop.xlane.xlu0 %474 }
 0x1bc   :  { %v476_v54 = vmul.f32 0.001953125, %v475_v53 }
 0x1bd   :  { %v485_v55 = vpop.xlane.xlu1 %484 }
 0x1be   :  { %v487_v56 = vmul.f32 %v476_v54, %v476_v54  ;;  %v486_v57 = vmul.f32 0.001953125, %v485_v55 }
 0x1c0   :  { %v488_v58 = vsub.f32 %v486_v57, %v487_v56 }
 0x1c2   :  { %v490_v59 = vadd.f32 1e-05, %v488_v58 }
 0x1c4   :  { %595 = vrsqrt.f32 %v490_v59  ;;  %vm497_vm2 = vweird.f32 %v490_v59 }
 0x1ca   :  { %v596_v60 = vpop.eup %595 }
 0x1cb   :  { %v492_v61 = vmul.f32 %v596_v60, %v490_v59  ;;  %vm498_vm0 = vweird.f32 %v596_v60 }
 0x1cc   :  { %vm499_vm3 = vmor %vm497_vm2, %vm498_vm0 }
 0x1cd   :  { %v493_v62 = vmul.f32 %v596_v60, %v492_v61 }
 0x1cf   :  { %v494_v3 = vmul.f32 0.5, %v493_v62 }
 0x1d1   :  { %v495_v5 = vsub.f32 1.5, %v494_v3 }
 0x1d3   :  { %v496_v11 = vmul.f32 %v596_v60, %v495_v5 }
 0x1d5   :  { %v500_v13 = vsel %vm499_vm3, %v596_v60, %v496_v11 }
 0x1d6   :  { %v501_v14 = vmul.f32 %v500_v13, %v489_v10 }
 0x1d8   :  { %507 = vperm.xlu1 %577, %v501_v14   ;;  %v503_v16 = vmul.f32 %v501_v14, %v476_v54 }
 0x1da   :  { %v504_v17 = vsub.f32 %v502_v15, %v503_v16 }
 0x1dc   :  { %516 = vperm.xlu2 %578, %v504_v17  }
 0x236   :  { %v517_v23 = vpop.permute.xlu2 %516 }
 0x24a   :  { %v508_v18 = vpop.permute.xlu1 %507 }
 0x24b   :  { %v510_v19 = vmul.f32 %v508_v18, %v409_v39  ;;  %v511_v20 = vmul.f32 %v508_v18, %v429_v40  ;;  %v512_v21 = vmul.f32 %v508_v18, %v449_v43  ;;  %v513_v22 = vmul.f32 %v508_v18, %v469_v45 }
 0x24d   :  { %v519_v24 = vadd.f32 %v517_v23, %v510_v19  ;;  %v520_v25 = vadd.f32 %v517_v23, %v511_v20  ;;  %v521_v26 = vadd.f32 %v517_v23, %v512_v21  ;;  %v522_v28 = vadd.f32 %v517_v23, %v513_v22 }
 0x24f   :  { %v523_v29 = vmul.f32 0.01, %v519_v24  ;;  %v524_v31 = vmul.f32 0.01, %v520_v25  ;;  %v525_v32 = vmul.f32 0.01, %v521_v26 }
 0x250   :  { %v526_v33 = vmul.f32 0.01, %v522_v28 }
 0x251   :  { %v527_v34 = vmax.f32 %v519_v24, %v523_v29  ;;  %v528_v6 = vmax.f32 %v520_v25, %v524_v31  ;;  %v529_v7 = vmax.f32 %v521_v26, %v525_v32 }
 0x252   :  { %v530_v37 = vmax.f32 %v522_v28, %v526_v33 }
 0x253   :  { %v531_v39 = vsub.f32 %v527_v34, %v651_v0  ;;  %v532_v40 = vsub.f32 %v528_v6, %v656_v1  ;;  %v533_v41 = vsub.f32 %v529_v7, %v661_v2 }
 0x254   :  { %v534_v42 = vsub.f32 %v530_v37, %v668_v4 }
 0x255   :  { %v539_v9 = vmul.f32 %v535_v35, %v531_v39  ;;  %v540_v43 = vmul.f32 %v536_v36, %v532_v40  ;;  %v541_v44 = vmul.f32 %v537_v38, %v533_v41 }
 0x256   :  { %v542_v45 = vmul.f32 %v538_v8, %v534_v42 }
 0x257   :  { %v543_v63 = vadd.f32 %v539_v9, %v651_v0  ;;  %v544_v12 = vadd.f32 %v540_v43, %v656_v1  ;;  %v545_v27 = vadd.f32 %v541_v44, %v661_v2 }
 0x258   :  { %v546_v46 = vadd.f32 %v542_v45, %v668_v4 }
 0x259   :  { %547 = vst [vmem:[%s793_s9] sm:$0xff] %v543_v63 }
 0x25a   :  { %548 = vst [vmem:[%s793_s9 + $0x8] sm:$0xff] %v544_v12 }
 0x25b   :  { %549 = vst [vmem:[%s793_s9 + $0x10] sm:$0xff] %v545_v27 }
 0x25c   :  { %550 = vst [vmem:[%s793_s9 + $0x18] sm:$0xff] %v546_v46 }

</bundles_post_ra>
